<compile_context>
chip_gen: v7x
topology: tpu7x:2x2x1
jax: 0.10.0
libtpu: 0.0.40
codegen_flags: <defaults>
</compile_context>

<pallas_src>
import functools

import jax
import jax.numpy as jnp
from jax import lax
from jax.experimental import pallas as pl
from jax.experimental.pallas import tpu as pltpu


def _round_up(v: int, mult: int) -> int:
    return (v + mult - 1) // mult * mult


def amsoftmax_kernel(x_ref, w_ref, lb_ref, loss_ref,
                     inv_xn_ref, rmax_ref, rsum_ref, tgt_ref,
                     *, margin, scale, n_classes, class_tile):
    c = pl.program_id(1)

    @pl.when(c == 0)
    def _init():
        xf = x_ref[...].astype(jnp.float32)
        xsq = jnp.sum(xf * xf, axis=1, keepdims=True)           # (TB, 1)
        # clamp(sumsq, 1e-24) == clamp(norm, 1e-12)^2  (matches torch.clamp)
        inv_xn_ref[...] = lax.rsqrt(jnp.maximum(xsq, 1e-24))
        rmax_ref[...] = jnp.full_like(rmax_ref, -jnp.inf)
        rsum_ref[...] = jnp.zeros_like(rsum_ref)
        tgt_ref[...] = jnp.zeros_like(tgt_ref)

    # Per-class-tile column inverse norm (depends only on this W tile).
    wf = w_ref[...].astype(jnp.float32)
    wsq = jnp.sum(wf * wf, axis=0, keepdims=True)               # (1, TC)
    inv_wn = lax.rsqrt(jnp.maximum(wsq, 1e-24))

    # MXU matmul in the native input dtype with f32 accumulation; the L2
    # normalizations are folded into two cheap broadcast multiplies.
    costh = jnp.dot(x_ref[...], w_ref[...], preferred_element_type=jnp.float32)
    costh = costh * inv_xn_ref[...] * inv_wn                    # (TB, TC)

    lb = lb_ref[...]                                            # (TB, 1) int32
    ids = lax.broadcasted_iota(jnp.int32, costh.shape, 1) + c * class_tile
    onehot = (ids == lb).astype(jnp.float32)

    logits = scale * (costh - margin * onehot)
    # Mask padded class columns (finite mask value avoids 0 * inf NaNs).
    logits = jnp.where(ids < n_classes, logits, jnp.float32(-1e30))

    # Target logit (its class lands in exactly one class tile per row).
    tgt_ref[...] += jnp.sum(logits * onehot, axis=1, keepdims=True)

    # Online (flash-style) logsumexp across class tiles.
    m_prev = rmax_ref[...]
    m_new = jnp.maximum(m_prev, jnp.max(logits, axis=1, keepdims=True))
    rsum_ref[...] = (rsum_ref[...] * jnp.exp(m_prev - m_new)
                     + jnp.sum(jnp.exp(logits - m_new), axis=1, keepdims=True))
    rmax_ref[...] = m_new

    @pl.when(c == pl.num_programs(1) - 1)
    def _finalize():
        loss_ref[...] = rmax_ref[...] + jnp.log(rsum_ref[...]) - tgt_ref[...]


def amsoftmax_loss(x, W, lb, *, m=0.3, s=15.0, class_tile=512):
    """x: (B, in_feats), W: (in_feats, n_classes), lb: (B,) int labels."""
    B, F = x.shape
    Fw, C = W.shape
    assert F == Fw and lb.shape[0] == B

    TB = min(128, _round_up(B, 8))
    B_pad = _round_up(B, TB)
    TC = min(class_tile, _round_up(C, 128))
    C_pad = _round_up(C, TC)

    if B_pad != B:
        x = jnp.pad(x, ((0, B_pad - B), (0, 0)))
        lb = jnp.pad(lb, (0, B_pad - B))
    if C_pad != C:
        W = jnp.pad(W, ((0, 0), (0, C_pad - C)))

    lb2d = lb.astype(jnp.int32).reshape(B_pad, 1)
    nb = B_pad // TB
    nc = C_pad // TC

    kernel = functools.partial(
        amsoftmax_kernel, margin=float(m), scale=float(s),
        n_classes=int(C), class_tile=int(TC))

    per_row = pl.pallas_call(
        kernel,
        out_shape=jax.ShapeDtypeStruct((B_pad, 1), jnp.float32),
        grid_spec=pltpu.PrefetchScalarGridSpec(
            num_scalar_prefetch=0,
            grid=(nb, nc),
            in_specs=[
                pl.BlockSpec((TB, F), lambda b, c: (b, 0)),    # x: resident per batch tile
                pl.BlockSpec((F, TC), lambda b, c: (0, c)),    # W: streamed class tiles
                pl.BlockSpec((TB, 1), lambda b, c: (b, 0)),    # labels
            ],
            out_specs=pl.BlockSpec((TB, 1), lambda b, c: (b, 0)),
            scratch_shapes=[
                pltpu.VMEM((TB, 1), jnp.float32),   # inv ||x||_2
                pltpu.VMEM((TB, 1), jnp.float32),   # running max
                pltpu.VMEM((TB, 1), jnp.float32),   # running sum(exp)
                pltpu.VMEM((TB, 1), jnp.float32),   # target logit
            ],
        ),
        compiler_params=pltpu.CompilerParams(
            dimension_semantics=("parallel", "arbitrary")),
    )(x, W, lb2d)

    # Mean (and dropping of padded rows) in the XLA wrapper keeps the batch
    # grid axis "parallel".
    return jnp.mean(per_row[:B, 0])


def _reference_loss(x, W, lb, m, s):
    xn = x / jnp.maximum(jnp.linalg.norm(x, axis=1, keepdims=True), 1e-12)
    wn = W / jnp.maximum(jnp.linalg.norm(W, axis=0, keepdims=True), 1e-12)
    costh = xn @ wn
    onehot = jax.nn.one_hot(lb, W.shape[1], dtype=jnp.float32)
    logits = s * (costh - m * onehot)
    return jnp.mean(jax.nn.logsumexp(logits, axis=1)
                    - jnp.sum(logits * onehot, axis=1))


if __name__ == "__main__":
    m, s = 0.3, 15.0
    keys = jax.random.split(jax.random.PRNGKey(0), 6)

    # Test 1: shapes matching the PyTorch module defaults (B=8, F=32, C=10).
    B, F, C = 8, 32, 10
    x = jax.random.normal(keys[0], (B, F), dtype=jnp.float32)
    std = (2.0 / (F + C)) ** 0.5                  # xavier_normal_(gain=1)
    W = std * jax.random.normal(keys[1], (F, C), dtype=jnp.float32)
    lb = jax.random.randint(keys[2], (B,), 0, C, dtype=jnp.int32)

    loss = jax.block_until_ready(amsoftmax_loss(x, W, lb, m=m, s=s))
    ref = _reference_loss(x, W, lb, m, s)
    assert jnp.allclose(loss, ref, rtol=1e-4, atol=1e-4), (loss, ref)

    # Test 2: ragged shapes -> exercises batch padding, class padding and the
    # online logsumexp across multiple class tiles.
    B2, F2, C2 = 5, 64, 300
    x2 = jax.random.normal(keys[3], (B2, F2), dtype=jnp.float32)
    std2 = (2.0 / (F2 + C2)) ** 0.5
    W2 = std2 * jax.random.normal(keys[4], (F2, C2), dtype=jnp.float32)
    lb2 = jax.random.randint(keys[5], (B2,), 0, C2, dtype=jnp.int32)

    loss2 = jax.block_until_ready(
        amsoftmax_loss(x2, W2, lb2, m=m, s=s, class_tile=128))
    ref2 = _reference_loss(x2, W2, lb2, m, s)
    assert jnp.allclose(loss2, ref2, rtol=1e-4, atol=1e-4), (loss2, ref2)

    print("KERNEL_OK")
</pallas_src>

<mosaic_0001>
module attributes {stable_mosaic.version = 11 : i64} {
  func.func @amsoftmax_kernel(%arg0: i32, %arg1: i32, %arg2: memref<8x32xf32, #tpu.memory_space<vmem>>, %arg3: memref<32x128xf32, #tpu.memory_space<vmem>>, %arg4: memref<8x1xi32, #tpu.memory_space<vmem>>, %arg5: memref<8x1xf32, #tpu.memory_space<vmem>>, %arg6: memref<8x1xf32, #tpu.memory_space<vmem>>, %arg7: memref<8x1xf32, #tpu.memory_space<vmem>>, %arg8: memref<8x1xf32, #tpu.memory_space<vmem>>, %arg9: memref<8x1xf32, #tpu.memory_space<vmem>>) attributes {dimension_semantics = [#tpu.dimension_semantics<parallel>, #tpu.dimension_semantics<arbitrary>], iteration_bounds = array<i64: 1, 1>, scalar_prefetch = 0 : i64, scratch_operands = 4 : i64, tpu.core_type = #tpu.core_type<tc>, window_params = [{transform_indices = @transform_0, window_bounds = array<i64: 8, 32>}, {transform_indices = @transform_1, window_bounds = array<i64: 32, 128>}, {transform_indices = @transform_2, window_bounds = array<i64: 8, 1>}, {transform_indices = @transform_3, window_bounds = array<i64: 8, 1>}]} {
    %c0_i32 = arith.constant 0 : i32
    %0 = arith.cmpi eq, %arg1, %c0_i32 : i32
    %1 = arith.extui %0 : i1 to i32
    %c0_i32_0 = arith.constant 0 : i32
    %2 = arith.cmpi ne, %1, %c0_i32_0 : i32
    scf.if %2 {
      %c0_32 = arith.constant 0 : index
      %c0_33 = arith.constant 0 : index
      %61 = vector.load %arg2[%c0_32, %c0_33] : memref<8x32xf32, #tpu.memory_space<vmem>>, vector<8x32xf32>
      %62 = arith.mulf %61, %61 : vector<8x32xf32>
      %cst_34 = arith.constant dense<0.000000e+00> : vector<8xf32>
      %63 = vector.multi_reduction <add>, %62, %cst_34 [1] : vector<8x32xf32> to vector<8xf32>
      %64 = vector.shape_cast %63 : vector<8xf32> to vector<8x1xf32>
      %cst_35 = arith.constant 1.000000e-24 : f32
      %65 = vector.broadcast %cst_35 : f32 to vector<8x1xf32>
      %66 = arith.maximumf %64, %65 : vector<8x1xf32>
      %67 = math.rsqrt %66 : vector<8x1xf32>
      %c0_36 = arith.constant 0 : index
      %c0_37 = arith.constant 0 : index
      %68 = vector.load %arg6[%c0_36, %c0_37] : memref<8x1xf32, #tpu.memory_space<vmem>>, vector<8x1xf32>
      tpu.vector_store %arg6[%c0_36, %c0_37], %67 {strides = array<i32>} : memref<8x1xf32, #tpu.memory_space<vmem>>, vector<8x1xf32>,
      %cst_38 = arith.constant 0xFF800000 : f32
      %69 = vector.broadcast %cst_38 : f32 to vector<8x1xf32>
      %c0_39 = arith.constant 0 : index
      %c0_40 = arith.constant 0 : index
      %70 = vector.load %arg7[%c0_39, %c0_40] : memref<8x1xf32, #tpu.memory_space<vmem>>, vector<8x1xf32>
      tpu.vector_store %arg7[%c0_39, %c0_40], %69 {strides = array<i32>} : memref<8x1xf32, #tpu.memory_space<vmem>>, vector<8x1xf32>,
      %cst_41 = arith.constant 0.000000e+00 : f32
      %71 = vector.broadcast %cst_41 : f32 to vector<8x1xf32>
      %c0_42 = arith.constant 0 : index
      %c0_43 = arith.constant 0 : index
      %72 = vector.load %arg8[%c0_42, %c0_43] : memref<8x1xf32, #tpu.memory_space<vmem>>, vector<8x1xf32>
      tpu.vector_store %arg8[%c0_42, %c0_43], %71 {strides = array<i32>} : memref<8x1xf32, #tpu.memory_space<vmem>>, vector<8x1xf32>,
      %cst_44 = arith.constant 0.000000e+00 : f32
      %73 = vector.broadcast %cst_44 : f32 to vector<8x1xf32>
      %c0_45 = arith.constant 0 : index
      %c0_46 = arith.constant 0 : index
      %74 = vector.load %arg9[%c0_45, %c0_46] : memref<8x1xf32, #tpu.memory_space<vmem>>, vector<8x1xf32>
      tpu.vector_store %arg9[%c0_45, %c0_46], %73 {strides = array<i32>} : memref<8x1xf32, #tpu.memory_space<vmem>>, vector<8x1xf32>,
    } else {
    }
    %c0 = arith.constant 0 : index
    %c0_1 = arith.constant 0 : index
    %3 = vector.load %arg3[%c0, %c0_1] : memref<32x128xf32, #tpu.memory_space<vmem>>, vector<32x128xf32>
    %4 = arith.mulf %3, %3 : vector<32x128xf32>
    %cst = arith.constant dense<0.000000e+00> : vector<128xf32>
    %5 = vector.multi_reduction <add>, %4, %cst [0] : vector<32x128xf32> to vector<128xf32>
    %6 = vector.shape_cast %5 : vector<128xf32> to vector<1x128xf32>
    %cst_2 = arith.constant 1.000000e-24 : f32
    %7 = vector.broadcast %cst_2 : f32 to vector<1x128xf32>
    %8 = arith.maximumf %6, %7 : vector<1x128xf32>
    %9 = math.rsqrt %8 : vector<1x128xf32>
    %c0_3 = arith.constant 0 : index
    %c0_4 = arith.constant 0 : index
    %10 = vector.load %arg2[%c0_3, %c0_4] : memref<8x32xf32, #tpu.memory_space<vmem>>, vector<8x32xf32>
    %c0_5 = arith.constant 0 : index
    %c0_6 = arith.constant 0 : index
    %11 = vector.load %arg3[%c0_5, %c0_6] : memref<32x128xf32, #tpu.memory_space<vmem>>, vector<32x128xf32>
    %cst_7 = arith.constant dense<0.000000e+00> : vector<8x128xf32>
    %12 = tpu.matmul %10, %11, %cst_7 {dimension_numbers = #tpu.dot_dimension_numbers<[1], [0], [0], [1], [0, 0, 1, 1], [], []>} : vector<8x32xf32>, vector<32x128xf32>, vector<8x128xf32> -> vector<8x128xf32>
    %c0_8 = arith.constant 0 : index
    %c0_9 = arith.constant 0 : index
    %13 = vector.load %arg6[%c0_8, %c0_9] : memref<8x1xf32, #tpu.memory_space<vmem>>, vector<8x1xf32>
    %14 = vector.broadcast %13 : vector<8x1xf32> to vector<8x128xf32>
    %15 = arith.mulf %12, %14 : vector<8x128xf32>
    %16 = vector.broadcast %9 : vector<1x128xf32> to vector<8x128xf32>
    %17 = arith.mulf %15, %16 : vector<8x128xf32>
    %c0_10 = arith.constant 0 : index
    %c0_11 = arith.constant 0 : index
    %18 = vector.load %arg4[%c0_10, %c0_11] : memref<8x1xi32, #tpu.memory_space<vmem>>, vector<8x1xi32>
    %19 = tpu.iota {dimensions = array<i32: 1>} : vector<8x128xi32>
    %c128_i32 = arith.constant 128 : i32
    %20 = arith.muli %arg1, %c128_i32 : i32
    %21 = vector.broadcast %20 : i32 to vector<8x128xi32>
    %22 = arith.addi %19, %21 : vector<8x128xi32>
    %23 = vector.broadcast %18 : vector<8x1xi32> to vector<8x128xi32>
    %24 = arith.cmpi eq, %22, %23 : vector<8x128xi32>
    %25 = arith.extui %24 : vector<8x128xi1> to vector<8x128xi32>
    %26 = arith.sitofp %25 : vector<8x128xi32> to vector<8x128xf32>
    %cst_12 = arith.constant 3.000000e-01 : f32
    %27 = vector.broadcast %cst_12 : f32 to vector<8x128xf32>
    %28 = arith.mulf %27, %26 : vector<8x128xf32>
    %29 = arith.subf %17, %28 : vector<8x128xf32>
    %cst_13 = arith.constant 1.500000e+01 : f32
    %30 = vector.broadcast %cst_13 : f32 to vector<8x128xf32>
    %31 = arith.mulf %30, %29 : vector<8x128xf32>
    %c10_i32 = arith.constant 10 : i32
    %32 = vector.broadcast %c10_i32 : i32 to vector<8x128xi32>
    %33 = arith.cmpi slt, %22, %32 : vector<8x128xi32>
    %cst_14 = arith.constant -1.000000e+30 : f32
    %34 = vector.broadcast %cst_14 : f32 to vector<8x128xf32>
    %35 = arith.select %33, %31, %34 : vector<8x128xi1>, vector<8x128xf32>
    %c0_15 = arith.constant 0 : index
    %c0_16 = arith.constant 0 : index
    %36 = vector.load %arg9[%c0_15, %c0_16] : memref<8x1xf32, #tpu.memory_space<vmem>>, vector<8x1xf32>
    %37 = arith.mulf %35, %26 : vector<8x128xf32>
    %cst_17 = arith.constant dense<0.000000e+00> : vector<8xf32>
    %38 = vector.multi_reduction <add>, %37, %cst_17 [1] : vector<8x128xf32> to vector<8xf32>
    %39 = vector.shape_cast %38 : vector<8xf32> to vector<8x1xf32>
    %40 = arith.addf %36, %39 : vector<8x1xf32>
    %c0_18 = arith.constant 0 : index
    %c0_19 = arith.constant 0 : index
    %41 = vector.load %arg9[%c0_18, %c0_19] : memref<8x1xf32, #tpu.memory_space<vmem>>, vector<8x1xf32>
    tpu.vector_store %arg9[%c0_18, %c0_19], %40 {strides = array<i32>} : memref<8x1xf32, #tpu.memory_space<vmem>>, vector<8x1xf32>,
    %c0_20 = arith.constant 0 : index
    %c0_21 = arith.constant 0 : index
    %42 = vector.load %arg7[%c0_20, %c0_21] : memref<8x1xf32, #tpu.memory_space<vmem>>, vector<8x1xf32>
    %cst_22 = arith.constant dense<0xFF800000> : vector<8xf32>
    %43 = vector.multi_reduction <maximumf>, %35, %cst_22 [1] : vector<8x128xf32> to vector<8xf32>
    %44 = vector.shape_cast %43 : vector<8xf32> to vector<8x1xf32>
    %45 = arith.maximumf %42, %44 : vector<8x1xf32>
    %c0_23 = arith.constant 0 : index
    %c0_24 = arith.constant 0 : index
    %46 = vector.load %arg8[%c0_23, %c0_24] : memref<8x1xf32, #tpu.memory_space<vmem>>, vector<8x1xf32>
    %47 = arith.subf %42, %45 : vector<8x1xf32>
    %48 = math.exp %47 : vector<8x1xf32>
    %49 = arith.mulf %46, %48 : vector<8x1xf32>
    %50 = vector.broadcast %45 : vector<8x1xf32> to vector<8x128xf32>
    %51 = arith.subf %35, %50 : vector<8x128xf32>
    %52 = math.exp %51 : vector<8x128xf32>
    %cst_25 = arith.constant dense<0.000000e+00> : vector<8xf32>
    %53 = vector.multi_reduction <add>, %52, %cst_25 [1] : vector<8x128xf32> to vector<8xf32>
    %54 = vector.shape_cast %53 : vector<8xf32> to vector<8x1xf32>
    %55 = arith.addf %49, %54 : vector<8x1xf32>
    %c0_26 = arith.constant 0 : index
    %c0_27 = arith.constant 0 : index
    %56 = vector.load %arg8[%c0_26, %c0_27] : memref<8x1xf32, #tpu.memory_space<vmem>>, vector<8x1xf32>
    tpu.vector_store %arg8[%c0_26, %c0_27], %55 {strides = array<i32>} : memref<8x1xf32, #tpu.memory_space<vmem>>, vector<8x1xf32>,
    %c0_28 = arith.constant 0 : index
    %c0_29 = arith.constant 0 : index
    %57 = vector.load %arg7[%c0_28, %c0_29] : memref<8x1xf32, #tpu.memory_space<vmem>>, vector<8x1xf32>
    tpu.vector_store %arg7[%c0_28, %c0_29], %45 {strides = array<i32>} : memref<8x1xf32, #tpu.memory_space<vmem>>, vector<8x1xf32>,
    %c0_i32_30 = arith.constant 0 : i32
    %58 = arith.cmpi eq, %arg1, %c0_i32_30 : i32
    %59 = arith.extui %58 : i1 to i32
    %c0_i32_31 = arith.constant 0 : i32
    %60 = arith.cmpi ne, %59, %c0_i32_31 : i32
    scf.if %60 {
      %c0_32 = arith.constant 0 : index
      %c0_33 = arith.constant 0 : index
      %61 = vector.load %arg7[%c0_32, %c0_33] : memref<8x1xf32, #tpu.memory_space<vmem>>, vector<8x1xf32>
      %c0_34 = arith.constant 0 : index
      %c0_35 = arith.constant 0 : index
      %62 = vector.load %arg8[%c0_34, %c0_35] : memref<8x1xf32, #tpu.memory_space<vmem>>, vector<8x1xf32>
      %63 = math.log %62 : vector<8x1xf32>
      %64 = arith.addf %61, %63 : vector<8x1xf32>
      %c0_36 = arith.constant 0 : index
      %c0_37 = arith.constant 0 : index
      %65 = vector.load %arg9[%c0_36, %c0_37] : memref<8x1xf32, #tpu.memory_space<vmem>>, vector<8x1xf32>
      %66 = arith.subf %64, %65 : vector<8x1xf32>
      %c0_38 = arith.constant 0 : index
      %c0_39 = arith.constant 0 : index
      %67 = vector.load %arg5[%c0_38, %c0_39] : memref<8x1xf32, #tpu.memory_space<vmem>>, vector<8x1xf32>
      tpu.vector_store %arg5[%c0_38, %c0_39], %66 {strides = array<i32>} : memref<8x1xf32, #tpu.memory_space<vmem>>, vector<8x1xf32>,
    } else {
    }
    return
  }
  func.func @transform_0(%arg0: i32, %arg1: i32) -> (i32, i32) {
    %c0_i32 = arith.constant 0 : i32
    %c0_i32_0 = arith.constant 0 : i32
    return %arg0, %c0_i32 : i32, i32
  }
  func.func @transform_1(%arg0: i32, %arg1: i32) -> (i32, i32) {
    %c0_i32 = arith.constant 0 : i32
    %c0_i32_0 = arith.constant 0 : i32
    return %c0_i32, %arg1 : i32, i32
  }
  func.func @transform_2(%arg0: i32, %arg1: i32) -> (i32, i32) {
    %c0_i32 = arith.constant 0 : i32
    %c0_i32_0 = arith.constant 0 : i32
    return %arg0, %c0_i32 : i32, i32
  }
  func.func @transform_3(%arg0: i32, %arg1: i32) -> (i32, i32) {
    %c0_i32 = arith.constant 0 : i32
    %c0_i32_0 = arith.constant 0 : i32
    return %arg0, %c0_i32 : i32, i32
  }
}

</mosaic_0001>

<bundles_post_ra>
// kernel: tpu_custom_call.1
= control target key start
LH: loop header
LB: loop body
LE: loop exit
PB: predicated region body
PF: predicated region fallthrough
CT: control target
= control target key end

     0   :  { %8 = vsyncpa [#allocation7], 0  ;;  %s277_s12 = smov [#allocation6]   ;;  %s336_s0 = inlined_call_operand.vmem [shape: f32[8,32], index: 0, kind: input, shape index: {}]   ;;  %s337_s1 = inlined_call_operand.hbm [shape: f32[32,128], index: 1, kind: input, shape index: {}]   ;;  %s338_s2 = inlined_call_operand.vmem [shape: s32[8,1], index: 2, kind: input, shape index: {}]   ;;  %s339_s3 = inlined_call_operand.vmem [shape: f32[8,1], index: 3, kind: output, shape index: {}]  }
   0x1   :  { %s16_s13 = sshll.u32 %s277_s12, 4  ;;  %s253_s16 = scalar_lea.hbm %s337_s1, 512  ;;  %s17_s13 = int_to_ptr.vmem [resolvable:$true] %s16_s13 }
   0x2   :  { %p254_p0 = scmp.ne.s32.totalorder %s337_s1, %s253_s16  ;;  %p257_p1 = scmp.lt.u32.totalorder %s253_s16, %s337_s1 }
   0x4   :  { %p259_p2 = pnand %p257_p1, %p254_p0 }
   0x6   :  { %262 = shalt.err (!%p259_p2)
}
   0x7   :  { %s263_s21 = scalar_lea.vmem %s17_s13, 512  ;;  %p268_p4 = scmp.lt.s32.totalorder %s17_s13, %s17_s13 }
   0x8   :  { %p264_p3 = scmp.ne.s32.totalorder %s17_s13, %s263_s21  ;;  %p269_p5 = scmp.lt.s32.totalorder %s263_s21, %s263_s21 }
   0xa   :  { %p270_p6 = por %p269_p5, %p268_p4 }
   0xc   :  { %p271_p7 = pnand %p270_p6, %p264_p3 }
   0xe   :  { %274 = shalt.err (!%p271_p7)
}
   0xf   :  { %s278_s22 = smov 128   ;;  %s279_s23 = smov 8  }
  0x10   :  { %22 = dma.hbm_to_vmem [thread:$0]  %s337_s1, 512, %s17_s13, [#allocation7], %s278_s22, %s278_s22, %s279_s23  }
  0x11   :  { %275 = dma.done.wait [#allocation7], 512  }
  0x12   :  { %276 = vsyncadd [#allocation7], 4294966784  ;;  %vm40_vm0 = vcmask 7168   ;;  %v280_v0 = vmov 0.0|0.0   ;;  %v281_v1 = vmov 0.0   ;;  %vm282_vm1 = vmmov 0  }
  0x13   :  { %227 = vmatprep.subr.bf16.mxu0 %v280_v0  ;;  %43 = vst.msk [vmem:[#allocation4] sm:$0xff] %vm40_vm0, %v281_v1  ;;  %44 = vst.msk [vmem:[#allocation5] sm:$0xff] %vm40_vm0, %v281_v1  ;;  %224 = vmatprep.mubr.msk.f32.mxu0 %vm282_vm1, %v281_v1  ;;  %v32_v2 = vld [vmem:[%s336_s0] sm:$0xff]  ;;  %vm34_vm2 = vcmask 261120   ;;  %v46_v4 = vld [vmem:[#allocation6 + $0x8] sm:$0xff]  ;;  %v283_v19 = vmov 0   ;;  %v148_v34 = vlaneseq }
  0x14   :  { %v45_v3 = vld [vmem:[#allocation6] sm:$0xff]  ;;  %v33_v5 = vmul.f32 %v32_v2, %v32_v2  ;;  %v50_v7 = vmul.f32 %v46_v4, %v46_v4  ;;  %v47_v9 = vld [vmem:[#allocation6 + $0x10] sm:$0xff]  ;;  %v48_v10 = vld [vmem:[#allocation6 + $0x18] sm:$0xff]  ;;  %242 = vset.pattern.permute.xlu1 %v283_v19  ;;  %241 = vset.pattern.permute.xlu0 %v283_v19  ;;  %v284_v24 = vmov -inf  }
  0x15   :  { %v49_v6 = vmul.f32 %v45_v3, %v45_v3  ;;  %v228_v8 = vpack.c.bf16 %v46_v4, %v45_v3  ;;  %v51_v11 = vmul.f32 %v47_v9, %v47_v9  ;;  %v52_v14 = vmul.f32 %v48_v10, %v48_v10  ;;  %v147_v18 = vld [vmem:[%s338_s2] sm:$0xff]  ;;  %42 = vst.msk [vmem:[#allocation3] sm:$0xff] %vm40_vm0, %v284_v24 }
  0x16   :  { %v35_v12 = vsel %vm34_vm2, %v33_v5, 0.0  ;;  %v231_v15 = vpack.c.bf16 %v48_v10, %v47_v9  ;;  %154 = vperm.xlu1 %242, %v147_v18   ;;  %v149_v35 = vand.u32 127, %v148_v34 }
  0x17   :  { %v53_v13 = vadd.f32 %v50_v7, %v49_v6  ;;  %229 = vmatpush3.bf16.msra.mxu0 %v228_v8  ;;  %36 = vadd.xlane.f32.xlu0 %v35_v12 }
  0x18   :  { %230 = vmatprep.subr.bf16.mxu0 %v280_v0  ;;  %vm162_vm4 = vcmp.lt.s32.totalorder %v149_v35, 10 }
  0x19   :  { %v54_v16 = vadd.f32 %v53_v13, %v51_v11 }
  0x1a   :  { %v164_v55 = vld [vmem:[#allocation5] sm:$0xff]  ;;  %v175_v60 = vld [vmem:[#allocation4] sm:$0xff] }
  0x1b   :  { %v55_v17 = vadd.f32 %v54_v16, %v52_v14  ;;  %232 = vmatpush3.bf16.msra.mxu0 %v231_v15 }
  0x1c   :  { %v171_v46 = vld [vmem:[#allocation3] sm:$0xff] }
  0x1d   :  { %v56_v27 = vrot.slane %v55_v17, 4 }
  0x1e   :  { %225 = vmatmul.mubr.msk.f32.vlgmr.msra.gmra.mrb[0].mxu0 %vm34_vm2, %v32_v2 }
  0x1f   :  { %v57_v28 = vadd.f32 %v56_v27, %v55_v17 }
  0x21   :  { %v58_v29 = vrot.slane %v57_v28, 2 }
  0x23   :  { %v59_v30 = vadd.f32 %v58_v29, %v57_v28 }
  0x25   :  { %v60_v31 = vrot.slane %v59_v30, 1 }
  0x27   :  { %v61_v32 = vadd.f32 %v60_v31, %v59_v30 }
  0x29   :  { %v62_v33 = vmax.f32 %v61_v32, 1e-24 }
  0x95   :  { %v155_v36 = vpop.permute.xlu1 %154 }
  0x96   :  { %vm156_vm3 = vcmp.eq.s32.totalorder %v149_v35, %v155_v36 }
  0x97   :  { %v210_v37 = vsel %vm156_vm3, 1.0, %v281_v1 }
  0x98   :  { %v159_v40 = vmul.f32 0.3, %v210_v37 }
  0xa4   :  { %v37_v20 = vpop.xlane.xlu0 %36 }
  0xa5   :  { %v38_v21 = vmax.f32 %v37_v20, 1e-24 }
  0xa7   :  { %243 = vrsqrt.f32 %v38_v21 }
  0xa8   :  { %245 = vrsqrt.f32 %v62_v33 }
  0xb1   :  { %v244_v22 = vpop.eup %243 }
  0xb2   :  { %41 = vst.msk [vmem:[#allocation2] sm:$0xff] %vm40_vm0, %v244_v22  ;;  %v246_v38 = vpop.eup %245 }
  0xb9   :  { %v139_v23 = vld [vmem:[#allocation2] sm:$0xff] }
  0xba   :  { %142 = vperm.xlu0 %241, %v139_v23  }
  0xf1   :  { %v135_v25 = vpop.f32.mrb[0].mxu0 }
  0xf2   :  { %v226_v26 = vpop.f32.mrb[1].mxu0 }
 0x139   :  { %v143_v39 = vpop.permute.xlu0 %142 }
 0x13a   :  { %v145_v41 = vmul.f32 %v143_v39, %v135_v25 }
 0x13c   :  { %v146_v42 = vmul.f32 %v246_v38, %v145_v41 }
 0x13e   :  { %v160_v43 = vsub.f32 %v146_v42, %v159_v40 }
 0x140   :  { %v161_v44 = vmul.f32 15.0, %v160_v43 }
 0x142   :  { %v163_v45 = vsel %vm162_vm4, %v161_v44, -1e+30 }
 0x143   :  { %172 = vmax.xlane.f32.xlu1 %v163_v45  ;;  %v165_v50 = vmul.f32 %v210_v37, %v163_v45 }
 0x1d0   :  { %v173_v47 = vpop.xlane.xlu1 %172 }
 0x1d1   :  { %v174_v48 = vmax.f32 %v171_v46, %v173_v47 }
 0x1d3   :  { %v176_v49 = vsub.f32 %v171_v46, %v174_v48  ;;  %192 = vst.msk [vmem:[#allocation3] sm:$0xff] %vm40_vm0, %v174_v48  ;;  %182 = vperm.xlu1 %242, %v174_v48  }
 0x1d5   :  { %v177_v58 = vmul.f32 1.442695, %v176_v49 }
 0x1da   :  { %v196_v3 = vld [vmem:[#allocation3] sm:$0xff] }
 0x1f7   :  { %166 = vadd.xlane.f32.xlu1 %v165_v50 }
 0x252   :  { %v183_v51 = vpop.permute.xlu1 %182 }
 0x253   :  { %v185_v52 = vsub.f32 %v163_v45, %v183_v51 }
 0x255   :  { %v186_v53 = vmul.f32 1.442695, %v185_v52 }
 0x257   :  { %247 = vpow2.f32 %v186_v53 }
 0x258   :  { %249 = vpow2.f32 %v177_v58 }
 0x261   :  { %v248_v54 = vpop.eup %247 }
 0x262   :  { %188 = vadd.xlane.f32.xlu0 %v248_v54  ;;  %v250_v59 = vpop.eup %249 }
 0x263   :  { %v179_v61 = vmul.f32 %v250_v59, %v175_v60 }
 0x284   :  { %v167_v56 = vpop.xlane.xlu1 %166 }
 0x285   :  { %v168_v57 = vadd.f32 %v167_v56, %v164_v55 }
 0x287   :  { %170 = vst.msk [vmem:[#allocation5] sm:$0xff] %vm40_vm0, %v168_v57 }
 0x28e   :  { %v201_v5 = vld [vmem:[#allocation5] sm:$0xff] }
 0x2ef   :  { %v189_v62 = vpop.xlane.xlu0 %188 }
 0x2f0   :  { %v190_v63 = vadd.f32 %v189_v62, %v179_v61 }
 0x2f2   :  { %191 = vst.msk [vmem:[#allocation4] sm:$0xff] %vm40_vm0, %v190_v63 }
 0x2f9   :  { %v197_v0 = vld [vmem:[#allocation4] sm:$0xff] }
 0x2fa   :  { %251 = vlog2.f32 %v197_v0 }
 0x304   :  { %v252_v1 = vpop.eup %251 }
 0x305   :  { %v199_v2 = vmul.f32 0.6931472, %v252_v1 }
 0x307   :  { %v200_v4 = vadd.f32 %v199_v2, %v196_v3 }
 0x309   :  { %v202_v6 = vsub.f32 %v200_v4, %v201_v5 }
 0x30b   :  { %203 = vst.msk [vmem:[%s339_s3] sm:$0xff] %vm40_vm0, %v202_v6 }
 0x30c   :  { %208 = vsyncpa [#allocation7], 1 }

</bundles_post_ra>
